<compile_context>
chip_gen: v5e
topology: v5e:2x2
jax: 0.10.0
libtpu: 0.0.40
codegen_flags: <defaults>
</compile_context>

<pallas_src>
import jax
import jax.numpy as jnp
from jax.experimental import pallas as pl
from jax.experimental.pallas import tpu as pltpu


def value_net_kernel(xt_ref, w1_ref, b1_ref, w2_ref, b2_ref, o_ref):
    # xt_ref: [S, TILE_B]   w1_ref: [H, S]   b1_ref: [H, 1]
    # w2_ref: [1, H]        b2_ref: [1, 1] (SMEM scalar)   o_ref: [1, TILE_B]
    h = jnp.dot(w1_ref[...], xt_ref[...], preferred_element_type=jnp.float32)  # [H, TILE_B]
    h = jnp.maximum(h + b1_ref[...], 0.0)                                      # ReLU, full-vreg VPU
    y = jnp.dot(w2_ref[...], h, preferred_element_type=jnp.float32)            # [1, TILE_B], lane-dense
    o_ref[...] = (y + b2_ref[0, 0]).astype(o_ref.dtype)


def _round_up(a, m):
    return ((a + m - 1) // m) * m


def value_network_forward(x, w1, b1, w2, b2, *, tile_b_max=1024):
    """x: [B, state_dim] f32. Returns [B, 1] f32 (same contract as the torch module)."""
    B, S = x.shape
    H = w1.shape[0]

    # Lane-dense tile of batch rows; adapt tile size so small batches don't over-pad
    # while large batches get >=512-row tiles (amortizes the ~0.35us per-step overhead).
    tile_b = min(tile_b_max, _round_up(B, 128))
    Bp = _round_up(B, tile_b)

    # Transpose (batch -> lanes) and zero-pad the ragged tail tile; padded columns are
    # computed but sliced away below, so correctness is unaffected.
    xt = jnp.pad(x.T, ((0, 0), (0, Bp - B)))
    b1c = b1.reshape(H, 1)
    b2s = b2.reshape(1, 1)

    flops = 2 * Bp * S * H + 2 * Bp * H
    bytes_accessed = 4 * (xt.size + Bp + w1.size + b1.size + w2.size + b2.size)

    out = pl.pallas_call(
        value_net_kernel,
        out_shape=jax.ShapeDtypeStruct((1, Bp), jnp.float32),
        grid=(Bp // tile_b,),
        in_specs=[
            pl.BlockSpec((S, tile_b), lambda i: (0, i)),        # x tile, pipelined over batch
            pl.BlockSpec((H, S), lambda i: (0, 0)),             # w1 resident in VMEM
            pl.BlockSpec((H, 1), lambda i: (0, 0)),             # b1 resident in VMEM
            pl.BlockSpec((1, H), lambda i: (0, 0)),             # w2 resident in VMEM
            pl.BlockSpec(memory_space=pltpu.MemorySpace.SMEM),  # b2 scalar on the scalar path
        ],
        out_specs=pl.BlockSpec((1, tile_b), lambda i: (0, i)),  # lane-dense output slab
        compiler_params=pltpu.CompilerParams(dimension_semantics=("parallel",)),
        cost_estimate=pl.CostEstimate(
            flops=flops, transcendentals=0, bytes_accessed=bytes_accessed),
    )(xt, w1, b1c, w2, b2s)

    # Restore the (B, 1) output contract.
    return out[0, :B].reshape(B, 1)


def init_params(key, state_dim, hidden=64):
    # Deterministic init mimicking torch.nn.Linear (uniform in +-1/sqrt(fan_in)),
    # stored in the torch layout: W [out_features, in_features].
    k1, k2, k3, k4 = jax.random.split(key, 4)
    bound1 = 1.0 / jnp.sqrt(jnp.float32(state_dim))
    bound2 = 1.0 / jnp.sqrt(jnp.float32(hidden))
    w1 = jax.random.uniform(k1, (hidden, state_dim), jnp.float32, -bound1, bound1)
    b1 = jax.random.uniform(k2, (hidden,), jnp.float32, -bound1, bound1)
    w2 = jax.random.uniform(k3, (1, hidden), jnp.float32, -bound2, bound2)
    b2 = jax.random.uniform(k4, (1,), jnp.float32, -bound2, bound2)
    return w1, b1, w2, b2


if __name__ == "__main__":
    key = jax.random.PRNGKey(0)
    batch, state_dim = 8, 32

    kx, kp = jax.random.split(key)
    x = jax.random.normal(kx, (batch, state_dim), jnp.float32)
    w1, b1, w2, b2 = init_params(kp, state_dim)

    out = value_network_forward(x, w1, b1, w2, b2)
    out = jax.block_until_ready(out)

    # Reference check in plain JAX (torch semantics: y = relu(x @ W1^T + b1) @ W2^T + b2).
    ref = jnp.maximum(x @ w1.T + b1, 0.0) @ w2.T + b2
    assert out.shape == (batch, 1)
    assert jnp.allclose(out, ref, atol=1e-5, rtol=1e-5)

    print("KERNEL_OK")
</pallas_src>

<mosaic_0001>
module attributes {stable_mosaic.version = 11 : i64} {
  func.func @value_net_kernel(%arg0: i32, %arg1: memref<32x128xf32, #tpu.memory_space<vmem>>, %arg2: memref<64x32xf32, #tpu.memory_space<vmem>>, %arg3: memref<64x1xf32, #tpu.memory_space<vmem>>, %arg4: memref<1x64xf32, #tpu.memory_space<vmem>>, %arg5: memref<1x1xf32, #tpu.memory_space<smem>>, %arg6: memref<1x128xf32, #tpu.memory_space<vmem>>) attributes {dimension_semantics = [#tpu.dimension_semantics<parallel>], iteration_bounds = array<i64: 1>, scalar_prefetch = 0 : i64, scratch_operands = 0 : i64, tpu.core_type = #tpu.core_type<tc>, window_params = [{transform_indices = @transform_0, window_bounds = array<i64: 32, 128>}, {pipeline_mode = #tpu.pipeline_mode<synchronous>, transform_indices = @transform_1, window_bounds = array<i64: 64, 32>}, {pipeline_mode = #tpu.pipeline_mode<synchronous>, transform_indices = @transform_2, window_bounds = array<i64: 64, 1>}, {pipeline_mode = #tpu.pipeline_mode<synchronous>, transform_indices = @transform_3, window_bounds = array<i64: 1, 64>}, {transform_indices = @transform_4, window_bounds = array<i64: 1, 1>}, {transform_indices = @transform_5, window_bounds = array<i64: 1, 128>}]} {
    %c0 = arith.constant 0 : index
    %c0_0 = arith.constant 0 : index
    %0 = vector.load %arg2[%c0, %c0_0] : memref<64x32xf32, #tpu.memory_space<vmem>>, vector<64x32xf32>
    %c0_1 = arith.constant 0 : index
    %c0_2 = arith.constant 0 : index
    %1 = vector.load %arg1[%c0_1, %c0_2] : memref<32x128xf32, #tpu.memory_space<vmem>>, vector<32x128xf32>
    %cst = arith.constant dense<0.000000e+00> : vector<64x128xf32>
    %2 = tpu.matmul %0, %1, %cst {dimension_numbers = #tpu.dot_dimension_numbers<[1], [0], [0], [1], [0, 0, 1, 1], [], []>} : vector<64x32xf32>, vector<32x128xf32>, vector<64x128xf32> -> vector<64x128xf32>
    %c0_3 = arith.constant 0 : index
    %c0_4 = arith.constant 0 : index
    %3 = vector.load %arg3[%c0_3, %c0_4] : memref<64x1xf32, #tpu.memory_space<vmem>>, vector<64x1xf32>
    %4 = vector.broadcast %3 : vector<64x1xf32> to vector<64x128xf32>
    %5 = arith.addf %2, %4 : vector<64x128xf32>
    %cst_5 = arith.constant 0.000000e+00 : f32
    %6 = vector.broadcast %cst_5 : f32 to vector<64x128xf32>
    %7 = arith.maximumf %5, %6 : vector<64x128xf32>
    %c0_6 = arith.constant 0 : index
    %c0_7 = arith.constant 0 : index
    %8 = vector.load %arg4[%c0_6, %c0_7] : memref<1x64xf32, #tpu.memory_space<vmem>>, vector<1x64xf32>
    %cst_8 = arith.constant dense<0.000000e+00> : vector<1x128xf32>
    %9 = tpu.matmul %8, %7, %cst_8 {dimension_numbers = #tpu.dot_dimension_numbers<[1], [0], [0], [1], [0, 0, 1, 1], [], []>} : vector<1x64xf32>, vector<64x128xf32>, vector<1x128xf32> -> vector<1x128xf32>
    %c0_9 = arith.constant 0 : index
    %c0_10 = arith.constant 0 : index
    %10 = memref.load %arg5[%c0_9, %c0_10] : memref<1x1xf32, #tpu.memory_space<smem>>
    %11 = vector.broadcast %10 : f32 to vector<1x128xf32>
    %12 = arith.addf %9, %11 : vector<1x128xf32>
    %c0_11 = arith.constant 0 : index
    %c0_12 = arith.constant 0 : index
    %13 = vector.load %arg6[%c0_11, %c0_12] : memref<1x128xf32, #tpu.memory_space<vmem>>, vector<1x128xf32>
    tpu.vector_store %arg6[%c0_11, %c0_12], %12 {strides = array<i32>} : memref<1x128xf32, #tpu.memory_space<vmem>>, vector<1x128xf32>,
    return
  }
  func.func @transform_0(%arg0: i32) -> (i32, i32) {
    %c0_i32 = arith.constant 0 : i32
    %c0_i32_0 = arith.constant 0 : i32
    return %c0_i32, %arg0 : i32, i32
  }
  func.func @transform_1(%arg0: i32) -> (i32, i32) {
    %c0_i32 = arith.constant 0 : i32
    %c0_i32_0 = arith.constant 0 : i32
    %c0_i32_1 = arith.constant 0 : i32
    return %c0_i32, %c0_i32_0 : i32, i32
  }
  func.func @transform_2(%arg0: i32) -> (i32, i32) {
    %c0_i32 = arith.constant 0 : i32
    %c0_i32_0 = arith.constant 0 : i32
    %c0_i32_1 = arith.constant 0 : i32
    return %c0_i32, %c0_i32_0 : i32, i32
  }
  func.func @transform_3(%arg0: i32) -> (i32, i32) {
    %c0_i32 = arith.constant 0 : i32
    %c0_i32_0 = arith.constant 0 : i32
    %c0_i32_1 = arith.constant 0 : i32
    return %c0_i32, %c0_i32_0 : i32, i32
  }
  func.func @transform_4(%arg0: i32) -> (i32, i32) {
    %c0_i32 = arith.constant 0 : i32
    %c0_i32_0 = arith.constant 0 : i32
    %c0_i32_1 = arith.constant 0 : i32
    return %c0_i32, %c0_i32_0 : i32, i32
  }
  func.func @transform_5(%arg0: i32) -> (i32, i32) {
    %c0_i32 = arith.constant 0 : i32
    %c0_i32_0 = arith.constant 0 : i32
    return %c0_i32, %arg0 : i32, i32
  }
}

</mosaic_0001>

<bundles_post_ra>
// kernel: tpu_custom_call.1
= control target key start
LH: loop header
LB: loop body
LE: loop exit
PB: predicated region body
PF: predicated region fallthrough
CT: control target
= control target key end

     0   :  { %v248_v3 = vmov 0   ;;  %vm82_vm0 = vcmask 261120   ;;  %s357_s0 = inlined_call_operand.vmem [shape: f32[32,128], index: 0, kind: input, shape index: {}]   ;;  %s358_s1 = inlined_call_operand.vmem [shape: f32[64,32], index: 1, kind: input, shape index: {}]   ;;  %s359_s2 = inlined_call_operand.vmem [shape: f32[64,1], index: 2, kind: input, shape index: {}]   ;;  %s360_s3 = inlined_call_operand.vmem [shape: f32[1,64], index: 3, kind: input, shape index: {}]   ;;  %s361_s4 = inlined_call_operand.<no memory space> [shape: f32[1,1], index: 4, kind: input, shape index: {}]   ;;  %s362_s5 = inlined_call_operand.hbm [shape: f32[1,128], index: 5, kind: output, shape index: {}]  }
   0x1   :  { %v33_v0 = vld [vmem:[%s357_s0 + $0x18] sm:$0xff]  ;;  %v32_v1 = vld [vmem:[%s357_s0 + $0x10] sm:$0xff]  ;;  %v31_v2 = vld [vmem:[%s357_s0 + $0x8] sm:$0xff]  ;;  %220 = vset.pattern.permute.xlu1 %v248_v3  ;;  %219 = vset.pattern.permute.xlu0 %v248_v3 }
   0x2   :  { %209 = vmatpush.msra.mxu2 %v33_v0  ;;  %210 = vmatpush.msra.mxu3 %v33_v0  ;;  %v41_v4 = vld [vmem:[%s359_s2 + $0x38] sm:$0xff]  ;;  %v30_v5 = vld [vmem:[%s357_s0] sm:$0xff]  ;;  %v28_v7 = vld [vmem:[%s358_s1 + $0x30] sm:$0xff] }
   0x3   :  { %119 = vmatpush.msra.mxu0 %v33_v0  ;;  %v25_v6 = vld [vmem:[%s358_s1 + $0x18] sm:$0xff]  ;;  %79 = vperm.xlu0 %219, %v41_v4   ;;  %v39_v8 = vld [vmem:[%s359_s2 + $0x28] sm:$0xff] }
   0x4   :  { %211 = vmatpush.msra.mxu2 %v32_v1  ;;  %212 = vmatpush.msra.mxu3 %v32_v1 }
   0x5   :  { %120 = vmatpush.msra.mxu0 %v32_v1 }
   0x6   :  { %213 = vmatpush.msra.mxu2 %v31_v2  ;;  %214 = vmatpush.msra.mxu3 %v31_v2 }
   0x7   :  { %121 = vmatpush.msra.mxu0 %v31_v2 }
   0x8   :  { %11 = vsyncpa [#allocation4], 0  ;;  %215 = vmatpush.msra.mxu2 %v30_v5  ;;  %216 = vmatpush.msra.mxu3 %v30_v5  ;;  %v22_v9 = vld [vmem:[%s358_s1] sm:$0xff]  ;;  %v37_v10 = vld [vmem:[%s359_s2 + $0x18] sm:$0xff]  ;;  %vm159_vm1 = vcmask 523264   ;;  %v158_v54 = vstv %s361_s4  ;;  %s249_s0 = smov [#allocation3]  }
   0x9   :  { %203 = vmatmul.msk.f32.vlgmr.msra.gmra.mxu2 %vm82_vm0, %v25_v6  ;;  %206 = vmatmul.msk.f32.vlgmr.msra.gmra.mxu3 %vm82_vm0, %v28_v7  ;;  %v40_v11 = vld [vmem:[%s359_s2 + $0x30] sm:$0xff]  ;;  %v26_v12 = vld [vmem:[%s358_s1 + $0x20] sm:$0xff]  ;;  %v29_v13 = vld [vmem:[%s358_s1 + $0x38] sm:$0xff]  ;;  %s189_s9 = sshll.u32 %s249_s0, 4  ;;  %s191_s12 = sshll.u32 %s362_s5, 4  ;;  %s190_s9 = int_to_ptr.vmem [resolvable:$true] %s189_s9  ;;  %s192_s12 = int_to_ptr.hbm [resolvable:$true] %s191_s12 }
   0xa   :  { %122 = vmatpush.msra.mxu0 %v30_v5  ;;  %69 = vperm.xlu1 %220, %v39_v8   ;;  %v38_v14 = vld [vmem:[%s359_s2 + $0x20] sm:$0xff]  ;;  %v23_v15 = vld [vmem:[%s358_s1 + $0x8] sm:$0xff]  ;;  %v36_v16 = vld [vmem:[%s359_s2 + $0x10] sm:$0xff] }
   0xb   :  { %200 = vmatmul.msk.f32.vlgmr.msra.gmra.mxu0 %vm82_vm0, %v22_v9  ;;  %221 = vset.pattern.permute.xlu2 %v248_v3  ;;  %v35_v17 = vld [vmem:[%s359_s2 + $0x8] sm:$0xff]  ;;  %v34_v19 = vld [vmem:[%s359_s2] sm:$0xff]  ;;  %v24_v20 = vld [vmem:[%s358_s1 + $0x10] sm:$0xff] }
   0xc   :  { %59 = vperm.xlu2 %221, %v37_v10   ;;  %74 = vperm.xlu0 %219, %v40_v11   ;;  %v27_v18 = vld [vmem:[%s358_s1 + $0x28] sm:$0xff]  ;;  %v156_v53 = vld [vmem:[%s360_s3] sm:$0x1] }
  0x11   :  { %204 = vmatmul.msk.f32.gmra.mxu2 %vm82_vm0, %v26_v12  ;;  %207 = vmatmul.msk.f32.gmra.mxu3 %vm82_vm0, %v29_v13 }
  0x12   :  { %64 = vperm.xlu1 %220, %v38_v14  }
  0x13   :  { %201 = vmatmul.msk.f32.gmra.mxu0 %vm82_vm0, %v23_v15 }
  0x14   :  { %54 = vperm.xlu2 %221, %v36_v16   ;;  %49 = vperm.xlu0 %219, %v35_v17  }
  0x19   :  { %205 = vmatmul.msk.f32.gmra.mxu2 %vm82_vm0, %v27_v18 }
  0x1a   :  { %44 = vperm.xlu1 %220, %v34_v19  }
  0x1b   :  { %202 = vmatmul.msk.f32.gmra.mxu0 %vm82_vm0, %v24_v20 }
  0x66   :  { %v60_v32 = vpop.permute.xlu2 %59 }
  0x6e   :  { %v55_v39 = vpop.permute.xlu2 %54 }
  0x75   :  { %v80_v21 = vpop.permute.xlu0 %79 }
  0x7c   :  { %v70_v25 = vpop.permute.xlu1 %69 }
  0x7e   :  { %v75_v26 = vpop.permute.xlu0 %74 }
  0x84   :  { %v65_v34 = vpop.permute.xlu1 %64 }
  0x86   :  { %v50_v43 = vpop.permute.xlu0 %49 }
  0x88   :  { %v124_v22 = vpop.f32.mrf.mxu0 }
  0x8c   :  { %v133_v23 = vpop.f32.mrf.mxu2  ;;  %v142_v24 = vpop.f32.mrf.mxu3 }
  0x8d   :  { %v143_v30 = vadd.f32 %v142_v24, %v75_v26  ;;  %v134_v41 = vadd.f32 %v133_v23, %v60_v32  ;;  %v45_v46 = vpop.permute.xlu1 %44 }
  0x8e   :  { %v125_v49 = vadd.f32 %v124_v22, %v45_v46 }
  0x8f   :  { %v154_v35 = vmax.f32 %v143_v30, 0.0  ;;  %v151_v47 = vmax.f32 %v134_v41, 0.0 }
  0x90   :  { %v127_v27 = vpop.f32.mrf.mxu0  ;;  %v148_v52 = vmax.f32 %v125_v49, 0.0 }
  0x91   :  { %v128_v48 = vadd.f32 %v127_v27, %v50_v43 }
  0x93   :  { %v149_v51 = vmax.f32 %v128_v48, 0.0 }
  0x94   :  { %v136_v28 = vpop.f32.mrf.mxu2  ;;  %v145_v29 = vpop.f32.mrf.mxu3 }
  0x95   :  { %v146_v31 = vadd.f32 %v145_v29, %v80_v21  ;;  %v137_v37 = vadd.f32 %v136_v28, %v65_v34 }
  0x97   :  { %v155_v33 = vmax.f32 %v146_v31, 0.0  ;;  %v152_v44 = vmax.f32 %v137_v37, 0.0 }
  0x98   :  { %v130_v40 = vpop.f32.mrf.mxu0 }
  0x99   :  { %171 = vmatpush.msra.mxu1 %v155_v33  ;;  %v131_v45 = vadd.f32 %v130_v40, %v55_v39 }
  0x9b   :  { %172 = vmatpush.msra.mxu1 %v154_v35  ;;  %v150_v50 = vmax.f32 %v131_v45, 0.0 }
  0x9c   :  { %v139_v36 = vpop.f32.mrf.mxu2 }
  0x9d   :  { %v140_v38 = vadd.f32 %v139_v36, %v70_v25 }
  0x9f   :  { %v153_v42 = vmax.f32 %v140_v38, 0.0 }
  0xa1   :  { %173 = vmatpush.msra.mxu1 %v153_v42 }
  0xa3   :  { %174 = vmatpush.msra.mxu1 %v152_v44 }
  0xa5   :  { %175 = vmatpush.msra.mxu1 %v151_v47 }
  0xa7   :  { %176 = vmatpush.msra.mxu1 %v150_v50 }
  0xa9   :  { %177 = vmatpush.msra.mxu1 %v149_v51 }
  0xab   :  { %178 = vmatpush.msra.mxu1 %v148_v52 }
  0xac   :  { %208 = vmatmul.msk.f32.vlgmr.msra.gmra.mxu1 %vm159_vm1, %v156_v53 }
 0x129   :  { %v180_v55 = vpop.f32.mrf.mxu1 }
 0x12a   :  { %v181_v56 = vadd.f32 %v180_v55, %v158_v54 }
 0x12c   :  { %183 = vst [vmem:[#allocation3] sm:$0x1] %v181_v56 }
 0x12d   :  { %194 = dma.vmem_to_hbm [thread:$0]  %s190_s9, 16, %s192_s12, [#allocation4]  }
 0x12e   :  { %246 = dma.done.wait [#allocation4], 16  }
 0x12f   :  { %247 = vsyncadd [#allocation4], 4294967280 }
 0x130   :  { %199 = vsyncpa [#allocation4], 1 }

</bundles_post_ra>
